<compile_context>
chip_gen: v5e
topology: v5e:2x2
jax: 0.10.0
libtpu: 0.0.40
codegen_flags: <defaults>
</compile_context>

<pallas_src>
import jax
import jax.numpy as jnp
from jax.experimental import pallas as pl
from jax.experimental.pallas import tpu as pltpu

HIDDEN = 128   # fixed by the module: Linear(3*H*W, 128)
TB_MAX = 256   # batch tile: fills the MXU M dim on v6e/v7x, amortizes w1 traffic
TK = 1024      # K tile for the large-D fallback path (D zero-padded up to it)


def _round_up(x, m):
    return (x + m - 1) // m * m


def _vmem_budget_bytes():
    """Physical VMEM minus headroom for compiler scratch / semaphores."""
    try:
        cap = pltpu.get_tpu_info().vmem_capacity_bytes
    except Exception:
        cap = 64 << 20  # conservative default (v7x per-TC VMEM)
    return int(cap * 3 // 4)   # ~48 MiB on v7x, ~96 MiB on v5e/v6e


# --------------------------------------------------------------------------
# Kernels
# --------------------------------------------------------------------------
def mlp_fused_kernel(x_ref, w1_ref, b1_ref, w2_ref, b2_ref, o_ref):
    # Grid: (batch tiles,).  Whole feature dim resident per tile.
    #   x_ref : (TB, D_pad)      activation tile
    #   w1_ref: (D_pad, 128)     layer1 weight (whole)
    #   b1_ref: (1, 128)         layer1 bias
    #   w2_ref: (128, C_pad)     layer2 weight (lane-dense, zero-padded)
    #   b2_ref: (1, C_pad)       layer2 bias  (zero-padded)
    #   o_ref : (TB, C_pad)      logits tile  (lane-dense)
    h = jnp.maximum(
        jnp.dot(x_ref[...], w1_ref[...], preferred_element_type=jnp.float32)
        + b1_ref[...],
        0.0)
    o_ref[...] = (jnp.dot(h, w2_ref[...], preferred_element_type=jnp.float32)
                  + b2_ref[...]).astype(o_ref.dtype)


def mlp_ksplit_kernel(x_ref, w1_ref, b1_ref, w2_ref, b2_ref, o_ref, h_acc):
    # Grid: (batch tiles, K tiles) -- large-D fallback; K is the reduction
    # axis, placed last.  Output block index is constant in k, so the output
    # tile stays resident and is written only at the final K step.
    k = pl.program_id(1)

    @pl.when(k == 0)
    def _():
        # Fold the layer-1 bias into the accumulator init (no zero-fill, no
        # epilogue bias add).
        h_acc[...] = jnp.broadcast_to(b1_ref[...], h_acc.shape)

    h_acc[...] += jnp.dot(x_ref[...], w1_ref[...],
                          preferred_element_type=jnp.float32)

    @pl.when(k == pl.num_programs(1) - 1)
    def _():
        h = jnp.maximum(h_acc[...], 0.0)                       # ReLU (VPU)
        o_ref[...] = (jnp.dot(h, w2_ref[...],
                              preferred_element_type=jnp.float32)
                      + b2_ref[...]).astype(o_ref.dtype)


# --------------------------------------------------------------------------
# Parameter preparation (done ONCE, hoisted out of the per-call path)
# --------------------------------------------------------------------------
def prepare_net_params(w1, b1, w2, b2, max_batch=TB_MAX):
    """Pads / lays out the weights once and picks the kernel variant.

    w1 : (3*H*W, 128)   (transpose of torch layer1.weight)
    b1 : (128,)
    w2 : (128, C)       (transpose of torch layer2.weight)
    b2 : (C,)
    """
    D, hidden = w1.shape
    assert hidden == HIDDEN
    C = w2.shape[1]

    C_pad = _round_up(C, 128)                       # lane-dense logits path
    TBmax = min(TB_MAX, _round_up(max_batch, 8))

    budget = _vmem_budget_bytes()
    D_pad_fused = _round_up(D, 128)
    # Worst-case VMEM for the fused variant (everything double-buffered).
    fused_bytes = 8 * (TBmax * D_pad_fused + D_pad_fused * HIDDEN + HIDDEN
                       + HIDDEN * C_pad + C_pad + TBmax * C_pad)
    fused = fused_bytes <= budget

    D_pad = D_pad_fused if fused else _round_up(D, TK)

    w1_p = w1 if D_pad == D else jnp.pad(w1, ((0, D_pad - D), (0, 0)))
    b1_p = b1.reshape(1, HIDDEN)
    w2_p = w2 if C_pad == C else jnp.pad(w2, ((0, 0), (0, C_pad - C)))
    b2_p = (b2 if C_pad == C else jnp.pad(b2, (0, C_pad - C))).reshape(1, C_pad)

    return dict(w1=w1_p, b1=b1_p, w2=w2_p, b2=b2_p,
                D=D, C=C, D_pad=D_pad, C_pad=C_pad, fused=fused)


# --------------------------------------------------------------------------
# Forward pass
# --------------------------------------------------------------------------
def net_forward(x_nchw, params):
    """Forward pass of Net.  x_nchw: (B, 3, H, W) f32 -> (B, C) f32 logits."""
    B = x_nchw.shape[0]
    D, C = params["D"], params["C"]
    D_pad, C_pad = params["D_pad"], params["C_pad"]
    w1_p, b1_p = params["w1"], params["b1"]
    w2_p, b2_p = params["w2"], params["b2"]

    x_flat = x_nchw.reshape(B, D)                   # matches torch x.flatten(1)

    # Batch tiling: sublane-dense, up to 256 rows per tile; >=2 tiles when
    # B >= 2*TB so the "parallel" axis can shard across v7x's two cores.
    TB = min(TB_MAX, _round_up(B, 8))
    B_pad = _round_up(B, TB)

    # Pad x only when actually needed (zero rows/cols contribute nothing).
    if B_pad != B or D_pad != D:
        x_p = jnp.pad(x_flat, ((0, B_pad - B), (0, D_pad - D)))
    else:
        x_p = x_flat

    budget = _vmem_budget_bytes()

    if params["fused"]:
        # ---- fused path: no K axis, whole layer-1 dot in one shot --------
        grid = (B_pad // TB,)
        vmem_bytes = 8 * (TB * D_pad + D_pad * HIDDEN + HIDDEN
                          + HIDDEN * C_pad + C_pad + TB * C_pad)
        out_pad = pl.pallas_call(
            mlp_fused_kernel,
            out_shape=jax.ShapeDtypeStruct((B_pad, C_pad), jnp.float32),
            grid_spec=pltpu.PrefetchScalarGridSpec(
                num_scalar_prefetch=0,
                grid=grid,
                in_specs=[
                    pl.BlockSpec((TB, D_pad), lambda i: (i, 0)),
                    pl.BlockSpec((D_pad, HIDDEN), lambda i: (0, 0)),
                    pl.BlockSpec((1, HIDDEN), lambda i: (0, 0)),
                    pl.BlockSpec((HIDDEN, C_pad), lambda i: (0, 0)),
                    pl.BlockSpec((1, C_pad), lambda i: (0, 0)),
                ],
                out_specs=pl.BlockSpec((TB, C_pad), lambda i: (i, 0)),
            ),
            compiler_params=pltpu.CompilerParams(
                dimension_semantics=("parallel",),
                vmem_limit_bytes=int(min(max(vmem_bytes, 8 << 20), budget)),
            ),
        )(x_p, w1_p, b1_p, w2_p, b2_p)
    else:
        # ---- large-D fallback: K-split with f32 accumulator ---------------
        grid = (B_pad // TB, D_pad // TK)
        const = pl.Buffered(1)   # constant-index operands: no double-buffer
        vmem_bytes = 4 * (2 * TB * TK          # x tile (double-buffered)
                          + 2 * TK * HIDDEN    # w1 tile (double-buffered)
                          + HIDDEN             # b1 (single-buffered)
                          + HIDDEN * C_pad     # w2 (single-buffered)
                          + C_pad              # b2 (single-buffered)
                          + 2 * TB * C_pad     # output tile
                          + TB * HIDDEN)       # accumulator scratch
        out_pad = pl.pallas_call(
            mlp_ksplit_kernel,
            out_shape=jax.ShapeDtypeStruct((B_pad, C_pad), jnp.float32),
            grid_spec=pltpu.PrefetchScalarGridSpec(
                num_scalar_prefetch=0,
                grid=grid,
                in_specs=[
                    pl.BlockSpec((TB, TK), lambda i, k: (i, k)),
                    pl.BlockSpec((TK, HIDDEN), lambda i, k: (k, 0)),
                    pl.BlockSpec((1, HIDDEN), lambda i, k: (0, 0),
                                 pipeline_mode=const),
                    pl.BlockSpec((HIDDEN, C_pad), lambda i, k: (0, 0),
                                 pipeline_mode=const),
                    pl.BlockSpec((1, C_pad), lambda i, k: (0, 0),
                                 pipeline_mode=const),
                ],
                out_specs=pl.BlockSpec((TB, C_pad), lambda i, k: (i, 0)),
                scratch_shapes=[pltpu.VMEM((TB, HIDDEN), jnp.float32)],
            ),
            compiler_params=pltpu.CompilerParams(
                dimension_semantics=("parallel", "arbitrary"),
                vmem_limit_bytes=int(min(max(vmem_bytes * 2, 8 << 20), budget)),
            ),
        )(x_p, w1_p, b1_p, w2_p, b2_p)

    return out_pad[:B, :C]


# --------------------------------------------------------------------------
if __name__ == "__main__":
    # Small shapes consistent with the module: batch=2, 3 channels, 16x16.
    num_classes = 10
    im_height = 16
    im_width = 16
    B = 2
    D = im_height * im_width * 3   # 768

    key = jax.random.PRNGKey(0)
    kx, k1, k2, k3, k4 = jax.random.split(key, 5)

    x = jax.random.normal(kx, (B, 3, im_height, im_width), dtype=jnp.float32)

    # Deterministic parameter init (uniform, roughly torch's default scale).
    w1 = jax.random.uniform(k1, (D, HIDDEN), jnp.float32, -1.0, 1.0) / jnp.sqrt(D)
    b1 = jax.random.uniform(k2, (HIDDEN,), jnp.float32, -1.0, 1.0) / jnp.sqrt(D)
    w2 = jax.random.uniform(k3, (HIDDEN, num_classes), jnp.float32, -1.0, 1.0) / jnp.sqrt(128.0)
    b2 = jax.random.uniform(k4, (num_classes,), jnp.float32, -1.0, 1.0) / jnp.sqrt(128.0)

    # Padding / layout done once (hoisted out of the per-call path).
    params = prepare_net_params(w1, b1, w2, b2, max_batch=B)

    out = net_forward(x, params)
    jax.block_until_ready(out)

    # Pure-JAX reference check of the same math.
    ref = jnp.maximum(x.reshape(B, D) @ w1 + b1, 0.0) @ w2 + b2
    assert out.shape == (B, num_classes)
    assert jnp.allclose(out, ref, atol=1e-3, rtol=1e-3), \
        float(jnp.max(jnp.abs(out - ref)))

    print("KERNEL_OK")
</pallas_src>

<mosaic_0001>
module attributes {stable_mosaic.version = 11 : i64} {
  func.func @mlp_fused_kernel(%arg0: i32, %arg1: memref<8x768xf32, #tpu.memory_space<vmem>>, %arg2: memref<768x128xf32, #tpu.memory_space<vmem>>, %arg3: memref<1x128xf32, #tpu.memory_space<vmem>>, %arg4: memref<128x128xf32, #tpu.memory_space<vmem>>, %arg5: memref<1x128xf32, #tpu.memory_space<vmem>>, %arg6: memref<8x128xf32, #tpu.memory_space<vmem>>) attributes {dimension_semantics = [#tpu.dimension_semantics<parallel>], iteration_bounds = array<i64: 1>, scalar_prefetch = 0 : i64, scratch_operands = 0 : i64, tpu.core_type = #tpu.core_type<tc>, window_params = [{transform_indices = @transform_0, window_bounds = array<i64: 8, 768>}, {pipeline_mode = #tpu.pipeline_mode<synchronous>, transform_indices = @transform_1, window_bounds = array<i64: 768, 128>}, {pipeline_mode = #tpu.pipeline_mode<synchronous>, transform_indices = @transform_2, window_bounds = array<i64: 1, 128>}, {pipeline_mode = #tpu.pipeline_mode<synchronous>, transform_indices = @transform_3, window_bounds = array<i64: 128, 128>}, {pipeline_mode = #tpu.pipeline_mode<synchronous>, transform_indices = @transform_4, window_bounds = array<i64: 1, 128>}, {transform_indices = @transform_5, window_bounds = array<i64: 8, 128>}]} {
    %c0 = arith.constant 0 : index
    %c0_0 = arith.constant 0 : index
    %0 = vector.load %arg1[%c0, %c0_0] : memref<8x768xf32, #tpu.memory_space<vmem>>, vector<8x768xf32>
    %c0_1 = arith.constant 0 : index
    %c0_2 = arith.constant 0 : index
    %1 = vector.load %arg2[%c0_1, %c0_2] : memref<768x128xf32, #tpu.memory_space<vmem>>, vector<768x128xf32>
    %cst = arith.constant dense<0.000000e+00> : vector<8x128xf32>
    %2 = tpu.matmul %0, %1, %cst {dimension_numbers = #tpu.dot_dimension_numbers<[1], [0], [0], [1], [0, 0, 1, 1], [], []>} : vector<8x768xf32>, vector<768x128xf32>, vector<8x128xf32> -> vector<8x128xf32>
    %c0_3 = arith.constant 0 : index
    %c0_4 = arith.constant 0 : index
    %3 = vector.load %arg3[%c0_3, %c0_4] : memref<1x128xf32, #tpu.memory_space<vmem>>, vector<1x128xf32>
    %4 = vector.broadcast %3 : vector<1x128xf32> to vector<8x128xf32>
    %5 = arith.addf %2, %4 : vector<8x128xf32>
    %cst_5 = arith.constant 0.000000e+00 : f32
    %6 = vector.broadcast %cst_5 : f32 to vector<8x128xf32>
    %7 = arith.maximumf %5, %6 : vector<8x128xf32>
    %c0_6 = arith.constant 0 : index
    %c0_7 = arith.constant 0 : index
    %8 = vector.load %arg4[%c0_6, %c0_7] : memref<128x128xf32, #tpu.memory_space<vmem>>, vector<128x128xf32>
    %cst_8 = arith.constant dense<0.000000e+00> : vector<8x128xf32>
    %9 = tpu.matmul %7, %8, %cst_8 {dimension_numbers = #tpu.dot_dimension_numbers<[1], [0], [0], [1], [0, 0, 1, 1], [], []>} : vector<8x128xf32>, vector<128x128xf32>, vector<8x128xf32> -> vector<8x128xf32>
    %c0_9 = arith.constant 0 : index
    %c0_10 = arith.constant 0 : index
    %10 = vector.load %arg5[%c0_9, %c0_10] : memref<1x128xf32, #tpu.memory_space<vmem>>, vector<1x128xf32>
    %11 = vector.broadcast %10 : vector<1x128xf32> to vector<8x128xf32>
    %12 = arith.addf %9, %11 : vector<8x128xf32>
    %c0_11 = arith.constant 0 : index
    %c0_12 = arith.constant 0 : index
    %13 = vector.load %arg6[%c0_11, %c0_12] : memref<8x128xf32, #tpu.memory_space<vmem>>, vector<8x128xf32>
    tpu.vector_store %arg6[%c0_11, %c0_12], %12 {strides = array<i32>} : memref<8x128xf32, #tpu.memory_space<vmem>>, vector<8x128xf32>,
    return
  }
  func.func @transform_0(%arg0: i32) -> (i32, i32) {
    %c0_i32 = arith.constant 0 : i32
    %c0_i32_0 = arith.constant 0 : i32
    return %arg0, %c0_i32 : i32, i32
  }
  func.func @transform_1(%arg0: i32) -> (i32, i32) {
    %c0_i32 = arith.constant 0 : i32
    %c0_i32_0 = arith.constant 0 : i32
    %c0_i32_1 = arith.constant 0 : i32
    return %c0_i32, %c0_i32_0 : i32, i32
  }
  func.func @transform_2(%arg0: i32) -> (i32, i32) {
    %c0_i32 = arith.constant 0 : i32
    %c0_i32_0 = arith.constant 0 : i32
    %c0_i32_1 = arith.constant 0 : i32
    return %c0_i32, %c0_i32_0 : i32, i32
  }
  func.func @transform_3(%arg0: i32) -> (i32, i32) {
    %c0_i32 = arith.constant 0 : i32
    %c0_i32_0 = arith.constant 0 : i32
    %c0_i32_1 = arith.constant 0 : i32
    return %c0_i32, %c0_i32_0 : i32, i32
  }
  func.func @transform_4(%arg0: i32) -> (i32, i32) {
    %c0_i32 = arith.constant 0 : i32
    %c0_i32_0 = arith.constant 0 : i32
    %c0_i32_1 = arith.constant 0 : i32
    return %c0_i32, %c0_i32_0 : i32, i32
  }
  func.func @transform_5(%arg0: i32) -> (i32, i32) {
    %c0_i32 = arith.constant 0 : i32
    %c0_i32_0 = arith.constant 0 : i32
    return %arg0, %c0_i32 : i32, i32
  }
}

</mosaic_0001>

<bundles_post_ra>
// kernel: tpu_custom_call.1
= control target key start
LH: loop header
LB: loop body
LE: loop exit
PB: predicated region body
PF: predicated region fallthrough
CT: control target
= control target key end

     0   :  { %10 = vsyncpa [#allocation3], 0  ;;  %s516_s0 = inlined_call_operand.hbm [shape: f32[8,768], index: 0, kind: input, shape index: {}]   ;;  %s517_s1 = inlined_call_operand.hbm [shape: f32[768,128], index: 1, kind: input, shape index: {}]   ;;  %s518_s2 = inlined_call_operand.vmem [shape: f32[1,128], index: 2, kind: input, shape index: {}]   ;;  %s519_s3 = inlined_call_operand.hbm [shape: f32[128,128], index: 3, kind: input, shape index: {}]   ;;  %s520_s4 = inlined_call_operand.vmem [shape: f32[1,128], index: 4, kind: input, shape index: {}]   ;;  %s521_s5 = inlined_call_operand.hbm [shape: f32[8,128], index: 5, kind: output, shape index: {}]  }
   0x1   :  { %11 = vsyncpa [#allocation6], 0  ;;  %s28_s20 = sshll.u32 %s517_s1, 4  ;;  %s29_s20 = int_to_ptr.hbm [resolvable:$true] %s28_s20 }
   0x2   :  { %12 = vsyncpa [#allocation4], 0  ;;  %s462_s21 = smov [#allocation5]   ;;  %s18_s25 = sshll.u32 %s516_s0, 4  ;;  %s19_s25 = int_to_ptr.hbm [resolvable:$true] %s18_s25 }
   0x3   :  { %s30_s22 = sshll.u32 %s462_s21, 4  ;;  %s463_s26 = smov 128   ;;  %s31_s22 = int_to_ptr.vmem [resolvable:$true] %s30_s22 }
   0x4   :  { %s464_s27 = smov 8   ;;  %s465_s28 = smov [#allocation2]  }
   0x5   :  { %36 = dma.hbm_to_vmem [thread:$0]  %s29_s20, 12288, %s31_s22, [#allocation6], %s463_s26, %s463_s26, %s464_s27  }
   0x6   :  { %s20_s29 = sshll.u32 %s465_s28, 4  ;;  %s43_s7 = sshll.u32 %s519_s3, 4  ;;  %s21_s29 = int_to_ptr.vmem [resolvable:$true] %s20_s29  ;;  %s44_s7 = int_to_ptr.hbm [resolvable:$true] %s43_s7 }
   0x7   :  { %23 = dma.hbm_to_vmem [thread:$0]  %s19_s25, 768, %s21_s29, [#allocation3]  }
   0x8   :  { %s466_s1 = smov [#allocation7]  }
   0x9   :  { %s45_s8 = sshll.u32 %s466_s1, 4  ;;  %s46_s8 = int_to_ptr.vmem [resolvable:$true] %s45_s8 }
   0xa   :  { %51 = dma.hbm_to_vmem [thread:$0]  %s44_s7, 2048, %s46_s8, [#allocation6], %s463_s26, %s463_s26, %s464_s27  }
   0xb   :  { %456 = dma.done.wait [#allocation3], 768  }
   0xc   :  { %457 = vsyncadd [#allocation3], 4294966528 }
   0xd   :  { %458 = dma.done.wait [#allocation6], 14336  }
   0xe   :  { %459 = vsyncadd [#allocation6], 4294952960  ;;  %v87_v0 = vld [vmem:[#allocation5 + $0x78] sm:$0xff]  ;;  %v86_v1 = vld [vmem:[#allocation5 + $0x70] sm:$0xff]  ;;  %s467_s11 = smov [#allocation8]   ;;  %s341_s14 = sshll.u32 %s521_s5, 4  ;;  %s342_s14 = int_to_ptr.hbm [resolvable:$true] %s341_s14 }
   0xf   :  { %v103_v2 = vld [vmem:[#allocation5 + $0xf8] sm:$0xff]  ;;  %172 = vmatpush.msra.mxu0 %v87_v0  ;;  %v102_v3 = vld [vmem:[#allocation5 + $0xf0] sm:$0xff]  ;;  %v85_v4 = vld [vmem:[#allocation5 + $0x68] sm:$0xff] }
  0x10   :  { %192 = vmatpush.msra.mxu1 %v103_v2  ;;  %v101_v5 = vld [vmem:[#allocation5 + $0xe8] sm:$0xff]  ;;  %v84_v6 = vld [vmem:[#allocation5 + $0x60] sm:$0xff]  ;;  %v83_v8 = vld [vmem:[#allocation5 + $0x58] sm:$0xff] }
  0x11   :  { %173 = vmatpush.msra.mxu0 %v86_v1  ;;  %v100_v7 = vld [vmem:[#allocation5 + $0xe0] sm:$0xff]  ;;  %v99_v9 = vld [vmem:[#allocation5 + $0xd8] sm:$0xff]  ;;  %v82_v10 = vld [vmem:[#allocation5 + $0x50] sm:$0xff] }
  0x12   :  { %193 = vmatpush.msra.mxu1 %v102_v3  ;;  %v119_v11 = vld [vmem:[#allocation5 + $0x178] sm:$0xff]  ;;  %v98_v12 = vld [vmem:[#allocation5 + $0xd0] sm:$0xff]  ;;  %v117_v15 = vld [vmem:[#allocation5 + $0x168] sm:$0xff] }
  0x13   :  { %174 = vmatpush.msra.mxu0 %v85_v4  ;;  %212 = vmatpush.msra.mxu2 %v119_v11  ;;  %v118_v13 = vld [vmem:[#allocation5 + $0x170] sm:$0xff]  ;;  %v135_v14 = vld [vmem:[#allocation5 + $0x1f8] sm:$0xff]  ;;  %v81_v17 = vld [vmem:[#allocation5 + $0x48] sm:$0xff] }
  0x14   :  { %194 = vmatpush.msra.mxu1 %v101_v5  ;;  %v134_v16 = vld [vmem:[#allocation5 + $0x1f0] sm:$0xff]  ;;  %v97_v18 = vld [vmem:[#allocation5 + $0xc8] sm:$0xff]  ;;  %232 = vmatpush.msra.mxu3 %v135_v14  ;;  %v116_v19 = vld [vmem:[#allocation5 + $0x160] sm:$0xff] }
  0x15   :  { %175 = vmatpush.msra.mxu0 %v84_v6  ;;  %213 = vmatpush.msra.mxu2 %v118_v13  ;;  %v133_v20 = vld [vmem:[#allocation5 + $0x1e8] sm:$0xff]  ;;  %v80_v21 = vld [vmem:[#allocation5 + $0x40] sm:$0xff]  ;;  %v115_v23 = vld [vmem:[#allocation5 + $0x158] sm:$0xff] }
  0x16   :  { %195 = vmatpush.msra.mxu1 %v100_v7  ;;  %v96_v22 = vld [vmem:[#allocation5 + $0xc0] sm:$0xff]  ;;  %233 = vmatpush.msra.mxu3 %v134_v16  ;;  %v79_v25 = vld [vmem:[#allocation5 + $0x38] sm:$0xff]  ;;  %v114_v27 = vld [vmem:[#allocation5 + $0x150] sm:$0xff] }
  0x17   :  { %176 = vmatpush.msra.mxu0 %v83_v8  ;;  %214 = vmatpush.msra.mxu2 %v117_v15  ;;  %v132_v24 = vld [vmem:[#allocation5 + $0x1e0] sm:$0xff]  ;;  %v95_v26 = vld [vmem:[#allocation5 + $0xb8] sm:$0xff]  ;;  %v78_v29 = vld [vmem:[#allocation5 + $0x30] sm:$0xff] }
  0x18   :  { %196 = vmatpush.msra.mxu1 %v99_v9  ;;  %234 = vmatpush.msra.mxu3 %v133_v20  ;;  %v131_v28 = vld [vmem:[#allocation5 + $0x1d8] sm:$0xff]  ;;  %v94_v30 = vld [vmem:[#allocation5 + $0xb0] sm:$0xff]  ;;  %v113_v31 = vld [vmem:[#allocation5 + $0x148] sm:$0xff] }
  0x19   :  { %177 = vmatpush.msra.mxu0 %v82_v10  ;;  %215 = vmatpush.msra.mxu2 %v116_v19  ;;  %v130_v32 = vld [vmem:[#allocation5 + $0x1d0] sm:$0xff]  ;;  %v77_v33 = vld [vmem:[#allocation5 + $0x28] sm:$0xff]  ;;  %v112_v35 = vld [vmem:[#allocation5 + $0x140] sm:$0xff] }
  0x1a   :  { %197 = vmatpush.msra.mxu1 %v98_v12  ;;  %235 = vmatpush.msra.mxu3 %v132_v24  ;;  %v93_v34 = vld [vmem:[#allocation5 + $0xa8] sm:$0xff]  ;;  %v76_v37 = vld [vmem:[#allocation5 + $0x20] sm:$0xff]  ;;  %v111_v39 = vld [vmem:[#allocation5 + $0x138] sm:$0xff] }
  0x1b   :  { %178 = vmatpush.msra.mxu0 %v81_v17  ;;  %216 = vmatpush.msra.mxu2 %v115_v23  ;;  %v129_v36 = vld [vmem:[#allocation5 + $0x1c8] sm:$0xff]  ;;  %v92_v38 = vld [vmem:[#allocation5 + $0xa0] sm:$0xff]  ;;  %v75_v41 = vld [vmem:[#allocation5 + $0x18] sm:$0xff] }
  0x1c   :  { %198 = vmatpush.msra.mxu1 %v97_v18  ;;  %236 = vmatpush.msra.mxu3 %v131_v28  ;;  %v128_v40 = vld [vmem:[#allocation5 + $0x1c0] sm:$0xff]  ;;  %v91_v42 = vld [vmem:[#allocation5 + $0x98] sm:$0xff]  ;;  %v110_v43 = vld [vmem:[#allocation5 + $0x130] sm:$0xff] }
  0x1d   :  { %179 = vmatpush.msra.mxu0 %v80_v21  ;;  %217 = vmatpush.msra.mxu2 %v114_v27  ;;  %v127_v44 = vld [vmem:[#allocation5 + $0x1b8] sm:$0xff]  ;;  %v74_v45 = vld [vmem:[#allocation5 + $0x10] sm:$0xff]  ;;  %v109_v47 = vld [vmem:[#allocation5 + $0x128] sm:$0xff] }
  0x1e   :  { %199 = vmatpush.msra.mxu1 %v96_v22  ;;  %237 = vmatpush.msra.mxu3 %v130_v32  ;;  %v90_v46 = vld [vmem:[#allocation5 + $0x90] sm:$0xff]  ;;  %v73_v49 = vld [vmem:[#allocation5 + $0x8] sm:$0xff]  ;;  %v108_v51 = vld [vmem:[#allocation5 + $0x120] sm:$0xff] }
  0x1f   :  { %180 = vmatpush.msra.mxu0 %v79_v25  ;;  %218 = vmatpush.msra.mxu2 %v113_v31  ;;  %v126_v48 = vld [vmem:[#allocation5 + $0x1b0] sm:$0xff]  ;;  %v89_v50 = vld [vmem:[#allocation5 + $0x88] sm:$0xff]  ;;  %v72_v53 = vld [vmem:[#allocation5] sm:$0xff] }
  0x20   :  { %200 = vmatpush.msra.mxu1 %v95_v26  ;;  %238 = vmatpush.msra.mxu3 %v129_v36  ;;  %v125_v52 = vld [vmem:[#allocation5 + $0x1a8] sm:$0xff]  ;;  %v88_v54 = vld [vmem:[#allocation5 + $0x80] sm:$0xff]  ;;  %v151_v55 = vld [vmem:[#allocation5 + $0x278] sm:$0xff] }
  0x21   :  { %181 = vmatpush.msra.mxu0 %v78_v29  ;;  %219 = vmatpush.msra.mxu2 %v112_v35  ;;  %v167_v56 = vld [vmem:[#allocation5 + $0x2f8] sm:$0xff]  ;;  %v124_v58 = vld [vmem:[#allocation5 + $0x1a0] sm:$0xff]  ;;  %v150_v59 = vld [vmem:[#allocation5 + $0x270] sm:$0xff] }
  0x22   :  { %201 = vmatpush.msra.mxu1 %v94_v30  ;;  %239 = vmatpush.msra.mxu3 %v128_v40  ;;  %v107_v57 = vld [vmem:[#allocation5 + $0x118] sm:$0xff]  ;;  %v166_v60 = vld [vmem:[#allocation5 + $0x2f0] sm:$0xff]  ;;  %v149_v63 = vld [vmem:[#allocation5 + $0x268] sm:$0xff] }
  0x23   :  { %182 = vmatpush.msra.mxu0 %v77_v33  ;;  %220 = vmatpush.msra.mxu2 %v111_v39  ;;  %v106_v61 = vld [vmem:[#allocation5 + $0x110] sm:$0xff]  ;;  %v123_v62 = vld [vmem:[#allocation5 + $0x198] sm:$0xff]  ;;  %v165_v0 = vld [vmem:[#allocation5 + $0x2e8] sm:$0xff] }
  0x24   :  { %202 = vmatpush.msra.mxu1 %v93_v34  ;;  %240 = vmatpush.msra.mxu3 %v127_v44  ;;  %v105_v1 = vld [vmem:[#allocation5 + $0x108] sm:$0xff]  ;;  %v122_v2 = vld [vmem:[#allocation5 + $0x190] sm:$0xff]  ;;  %v148_v3 = vld [vmem:[#allocation5 + $0x260] sm:$0xff] }
  0x25   :  { %183 = vmatpush.msra.mxu0 %v76_v37  ;;  %221 = vmatpush.msra.mxu2 %v110_v43  ;;  %v164_v4 = vld [vmem:[#allocation5 + $0x2e0] sm:$0xff]  ;;  %v121_v6 = vld [vmem:[#allocation5 + $0x188] sm:$0xff]  ;;  %v147_v7 = vld [vmem:[#allocation5 + $0x258] sm:$0xff] }
  0x26   :  { %203 = vmatpush.msra.mxu1 %v92_v38  ;;  %241 = vmatpush.msra.mxu3 %v126_v48  ;;  %v104_v5 = vld [vmem:[#allocation5 + $0x100] sm:$0xff]  ;;  %v163_v8 = vld [vmem:[#allocation5 + $0x2d8] sm:$0xff]  ;;  %v146_v11 = vld [vmem:[#allocation5 + $0x250] sm:$0xff] }
  0x27   :  { %184 = vmatpush.msra.mxu0 %v75_v41  ;;  %222 = vmatpush.msra.mxu2 %v109_v47  ;;  %v68_v9 = vld [vmem:[#allocation2 + $0x10] sm:$0xff]  ;;  %v162_v12 = vld [vmem:[#allocation5 + $0x2d0] sm:$0xff]  ;;  %v69_v14 = vld [vmem:[#allocation2 + $0x18] sm:$0xff] }
  0x28   :  { %204 = vmatpush.msra.mxu1 %v91_v42  ;;  %242 = vmatpush.msra.mxu3 %v125_v52  ;;  %v120_v10 = vld [vmem:[#allocation5 + $0x180] sm:$0xff]  ;;  %v66_v13 = vld [vmem:[#allocation2] sm:$0xff]  ;;  %v145_v15 = vld [vmem:[#allocation5 + $0x248] sm:$0xff] }
  0x29   :  { %185 = vmatpush.msra.mxu0 %v74_v45  ;;  %223 = vmatpush.msra.mxu2 %v108_v51  ;;  %v161_v16 = vld [vmem:[#allocation5 + $0x2c8] sm:$0xff]  ;;  %v67_v17 = vld [vmem:[#allocation2 + $0x8] sm:$0xff]  ;;  %v144_v19 = vld [vmem:[#allocation5 + $0x240] sm:$0xff] }
  0x2a   :  { %205 = vmatpush.msra.mxu1 %v90_v46  ;;  %243 = vmatpush.msra.mxu3 %v124_v58  ;;  %v308_v18 = vld [vmem:[#allocation7 + $0x78] sm:$0xff]  ;;  %v160_v20 = vld [vmem:[#allocation5 + $0x2c0] sm:$0xff]  ;;  %v307_v21 = vld [vmem:[#allocation7 + $0x70] sm:$0xff] }
  0x2b   :  { %186 = vmatpush.msra.mxu0 %v73_v49  ;;  %224 = vmatpush.msra.mxu2 %v107_v57  ;;  %v143_v22 = vld [vmem:[#allocation5 + $0x238] sm:$0xff]  ;;  %v306_v24 = vld [vmem:[#allocation7 + $0x68] sm:$0xff]  ;;  %v142_v25 = vld [vmem:[#allocation5 + $0x230] sm:$0xff] }
  0x2c   :  { %206 = vmatpush.msra.mxu1 %v89_v50  ;;  %244 = vmatpush.msra.mxu3 %v123_v62  ;;  %v159_v23 = vld [vmem:[#allocation5 + $0x2b8] sm:$0xff]  ;;  %v158_v26 = vld [vmem:[#allocation5 + $0x2b0] sm:$0xff]  ;;  %v305_v27 = vld [vmem:[#allocation7 + $0x60] sm:$0xff] }
  0x2d   :  { %187 = vmatpush.msra.mxu0 %v72_v53  ;;  %225 = vmatpush.msra.mxu2 %v106_v61  ;;  %v141_v28 = vld [vmem:[#allocation5 + $0x228] sm:$0xff]  ;;  %v304_v30 = vld [vmem:[#allocation7 + $0x58] sm:$0xff]  ;;  %v140_v31 = vld [vmem:[#allocation5 + $0x220] sm:$0xff] }
  0x2e   :  { %207 = vmatpush.msra.mxu1 %v88_v54  ;;  %245 = vmatpush.msra.mxu3 %v122_v2  ;;  %v157_v29 = vld [vmem:[#allocation5 + $0x2a8] sm:$0xff]  ;;  %v156_v32 = vld [vmem:[#allocation5 + $0x2a0] sm:$0xff]  ;;  %v303_v33 = vld [vmem:[#allocation7 + $0x50] sm:$0xff] }
  0x2f   :  { %252 = vmatpush.msrb.mxu0 %v151_v55  ;;  %226 = vmatpush.msra.mxu2 %v105_v1  ;;  %v139_v34 = vld [vmem:[#allocation5 + $0x218] sm:$0xff]  ;;  %v302_v36 = vld [vmem:[#allocation7 + $0x48] sm:$0xff]  ;;  %v138_v37 = vld [vmem:[#allocation5 + $0x210] sm:$0xff] }
  0x30   :  { %272 = vmatpush.msrb.mxu1 %v167_v56  ;;  %246 = vmatpush.msra.mxu3 %v121_v6  ;;  %v155_v35 = vld [vmem:[#allocation5 + $0x298] sm:$0xff]  ;;  %v154_v38 = vld [vmem:[#allocation5 + $0x290] sm:$0xff]  ;;  %v301_v39 = vld [vmem:[#allocation7 + $0x40] sm:$0xff] }
  0x31   :  { %253 = vmatpush.msrb.mxu0 %v150_v59  ;;  %227 = vmatpush.msra.mxu2 %v104_v5  ;;  %v137_v40 = vld [vmem:[#allocation5 + $0x208] sm:$0xff]  ;;  %v136_v42 = vld [vmem:[#allocation5 + $0x200] sm:$0xff]  ;;  %v70_v44 = vld [vmem:[#allocation2 + $0x20] sm:$0xff] }
  0x32   :  { %273 = vmatpush.msrb.mxu1 %v166_v60  ;;  %228 = vmatmul.f32.vlgmr.msra.gmra.mxu2 %v68_v9  ;;  %v153_v41 = vld [vmem:[#allocation5 + $0x288] sm:$0xff]  ;;  %v152_v43 = vld [vmem:[#allocation5 + $0x280] sm:$0xff]  ;;  %v71_v45 = vld [vmem:[#allocation2 + $0x28] sm:$0xff] }
  0x33   :  { %254 = vmatpush.msrb.mxu0 %v149_v63  ;;  %247 = vmatpush.msra.mxu3 %v120_v10  ;;  %v300_v46 = vld [vmem:[#allocation7 + $0x38] sm:$0xff]  ;;  %v299_v47 = vld [vmem:[#allocation7 + $0x30] sm:$0xff]  ;;  %v298_v48 = vld [vmem:[#allocation7 + $0x28] sm:$0xff] }
  0x34   :  { %274 = vmatpush.msrb.mxu1 %v165_v0  ;;  %188 = vmatmul.f32.vlgmr.msra.gmra.mxu0 %v66_v13  ;;  %v297_v49 = vld [vmem:[#allocation7 + $0x20] sm:$0xff]  ;;  %v296_v50 = vld [vmem:[#allocation7 + $0x18] sm:$0xff]  ;;  %v295_v51 = vld [vmem:[#allocation7 + $0x10] sm:$0xff] }
  0x35   :  { %255 = vmatpush.msrb.mxu0 %v148_v3  ;;  %248 = vmatmul.f32.vlgmr.msra.gmra.mxu3 %v69_v14  ;;  %v294_v52 = vld [vmem:[#allocation7 + $0x8] sm:$0xff]  ;;  %v293_v53 = vld [vmem:[#allocation7] sm:$0xff]  ;;  %v358_v54 = vld [vmem:[%s518_s2] ss:$0 sm:$0xff]  ;;  %s339_s2 = sshll.u32 %s467_s11, 4  ;;  %s340_s2 = int_to_ptr.vmem [resolvable:$true] %s339_s2 }
  0x36   :  { %275 = vmatpush.msrb.mxu1 %v164_v4  ;;  %313 = vmatpush.msrb.mxu2 %v308_v18  ;;  %v359_v4 = vld [vmem:[%s520_s4] ss:$0 sm:$0xff] }
  0x37   :  { %256 = vmatpush.msrb.mxu0 %v147_v7  ;;  %208 = vmatmul.f32.vlgmr.msra.gmra.mxu1 %v67_v17 }
  0x38   :  { %276 = vmatpush.msrb.mxu1 %v163_v8  ;;  %314 = vmatpush.msrb.mxu2 %v307_v21 }
  0x39   :  { %257 = vmatpush.msrb.mxu0 %v146_v11 }
  0x3a   :  { %277 = vmatpush.msrb.mxu1 %v162_v12  ;;  %315 = vmatpush.msrb.mxu2 %v306_v24 }
  0x3b   :  { %258 = vmatpush.msrb.mxu0 %v145_v15 }
  0x3c   :  { %278 = vmatpush.msrb.mxu1 %v161_v16  ;;  %316 = vmatpush.msrb.mxu2 %v305_v27 }
  0x3d   :  { %259 = vmatpush.msrb.mxu0 %v144_v19 }
  0x3e   :  { %279 = vmatpush.msrb.mxu1 %v160_v20  ;;  %317 = vmatpush.msrb.mxu2 %v304_v30 }
  0x3f   :  { %260 = vmatpush.msrb.mxu0 %v143_v22 }
  0x40   :  { %280 = vmatpush.msrb.mxu1 %v159_v23  ;;  %318 = vmatpush.msrb.mxu2 %v303_v33 }
  0x41   :  { %261 = vmatpush.msrb.mxu0 %v142_v25 }
  0x42   :  { %281 = vmatpush.msrb.mxu1 %v158_v26  ;;  %319 = vmatpush.msrb.mxu2 %v302_v36 }
  0x43   :  { %262 = vmatpush.msrb.mxu0 %v141_v28 }
  0x44   :  { %282 = vmatpush.msrb.mxu1 %v157_v29  ;;  %320 = vmatpush.msrb.mxu2 %v301_v39 }
  0x45   :  { %263 = vmatpush.msrb.mxu0 %v140_v31 }
  0x46   :  { %283 = vmatpush.msrb.mxu1 %v156_v32  ;;  %321 = vmatpush.msrb.mxu2 %v300_v46 }
  0x47   :  { %264 = vmatpush.msrb.mxu0 %v139_v34 }
  0x48   :  { %284 = vmatpush.msrb.mxu1 %v155_v35  ;;  %322 = vmatpush.msrb.mxu2 %v299_v47 }
  0x49   :  { %265 = vmatpush.msrb.mxu0 %v138_v37 }
  0x4a   :  { %285 = vmatpush.msrb.mxu1 %v154_v38  ;;  %323 = vmatpush.msrb.mxu2 %v298_v48 }
  0x4b   :  { %266 = vmatpush.msrb.mxu0 %v137_v40 }
  0x4c   :  { %286 = vmatpush.msrb.mxu1 %v153_v41  ;;  %324 = vmatpush.msrb.mxu2 %v297_v49 }
  0x4d   :  { %267 = vmatpush.msrb.mxu0 %v136_v42 }
  0x4e   :  { %287 = vmatpush.msrb.mxu1 %v152_v43  ;;  %268 = vmatmul.f32.vlgmr.msrb.gmra.mxu0 %v70_v44 }
  0x4f   :  { %288 = vmatmul.f32.vlgmr.msrb.gmra.mxu1 %v71_v45  ;;  %325 = vmatpush.msrb.mxu2 %v296_v50 }
  0x51   :  { %326 = vmatpush.msrb.mxu2 %v295_v51 }
  0x53   :  { %327 = vmatpush.msrb.mxu2 %v294_v52 }
  0x55   :  { %328 = vmatpush.msrb.mxu2 %v293_v53 }
  0xb1   :  { %v189_v55 = vpop.f32.mrf.mxu0 }
  0xb2   :  { %v190_v56 = vadd.f32 %v358_v54, %v189_v55 }
  0xb4   :  { %v209_v57 = vpop.f32.mrf.mxu1 }
  0xb5   :  { %v210_v58 = vadd.f32 %v209_v57, %v190_v56  ;;  %v229_v59 = vpop.f32.mrf.mxu2 }
  0xb7   :  { %v230_v60 = vadd.f32 %v229_v59, %v210_v58 }
  0xb8   :  { %v249_v61 = vpop.f32.mrf.mxu3 }
  0xb9   :  { %v250_v62 = vadd.f32 %v249_v61, %v230_v60 }
  0xcb   :  { %v269_v63 = vpop.f32.mrf.mxu0 }
  0xcc   :  { %v289_v0 = vpop.f32.mrf.mxu1  ;;  %v270_v1 = vadd.f32 %v269_v63, %v250_v62 }
  0xce   :  { %v290_v2 = vadd.f32 %v289_v0, %v270_v1 }
  0xd0   :  { %v292_v3 = vmax.f32 %v290_v2, 0.0 }
  0xd2   :  { %329 = vmatmul.f32.vlgmr.msrb.gmra.mxu2 %v292_v3 }
 0x155   :  { %v330_v5 = vpop.f32.mrf.mxu2 }
 0x156   :  { %v331_v6 = vadd.f32 %v359_v4, %v330_v5 }
 0x158   :  { %333 = vst [vmem:[#allocation8] sm:$0xff] %v331_v6 }
 0x159   :  { %344 = dma.vmem_to_hbm [thread:$0]  %s340_s2, 128, %s342_s14, [#allocation4]  }
 0x15a   :  { %460 = dma.done.wait [#allocation4], 128  }
 0x15b   :  { %461 = vsyncadd [#allocation4], 4294967168 }
 0x15c   :  { %349 = vsyncpa [#allocation3], 1 }
 0x15d   :  { %350 = vsyncpa [#allocation6], 1 }
 0x15e   :  { %351 = vsyncpa [#allocation4], 1 }

</bundles_post_ra>
